<compile_context>
chip_gen: v6e
topology: v6e:2x2x1
jax: 0.10.0
libtpu: 0.0.40
codegen_flags: <defaults>
</compile_context>

<pallas_src>
import functools

import jax
import jax.numpy as jnp
from jax.experimental import pallas as pl
from jax.experimental.pallas import tpu as pltpu


# ----------------------------------------------------------------------------
# Fused kernel: avg-pool + fc1 + ReLU + fc2 + softmax + weighted channel sum
# ----------------------------------------------------------------------------
def _channel_attention_kernel(hw, x_ref, w1_ref, b1_ref, w2_ref, b2_ref, o_ref):
    # x_ref : (1, C, HWp)    w1: (C, 2C)   b1: (1, 2C)   w2: (2C, C)  b2: (1, C)
    # o_ref : (1, 1, HWp)
    x = x_ref[0]                                              # (C, HWp) f32

    # Global average pooling.  Padding columns are zero, so summing the padded
    # slab and dividing by the true H*W is exact.
    inv_hw = 1.0 / float(hw)
    pooled_col = jnp.sum(x, axis=-1, keepdims=True) * inv_hw  # (C, 1)

    # fc1:  (1, 2C) = pooled(1, C) @ w1(C, 2C) == sum_c pooled[c] * w1[c, :]
    # (written as broadcast-mul + sublane reduce so no transpose is needed)
    h = jnp.sum(pooled_col * w1_ref[...], axis=0, keepdims=True)  # (1, 2C)
    h = jnp.maximum(h + b1_ref[...], 0.0)

    # fc2:  (1, C)
    logits = jnp.dot(h, w2_ref[...], preferred_element_type=jnp.float32)
    logits = logits + b2_ref[...]

    # softmax over the channel dim
    logits = logits - jnp.max(logits, axis=-1, keepdims=True)
    e = jnp.exp(logits)
    attn = e / jnp.sum(e, axis=-1, keepdims=True)             # (1, C)

    # sum_c attn[c] * x[c, :]  ==  (1, C) @ (C, HWp): one lane-dense matmul,
    # stored once as a full (1, HWp) tile.
    o_ref[0] = jnp.dot(attn, x,
                       preferred_element_type=jnp.float32).astype(o_ref.dtype)


def channel_attention_forward(params, x_nchw):
    """x_nchw: (B, C, H, W) float32 -> (B, 1, H, W) float32."""
    B, C, H, W = x_nchw.shape
    hw = H * W
    hwp = ((hw + 127) // 128) * 128                 # lane-dense spatial axis
    xf = x_nchw.reshape(B, C, hw)
    if hwp != hw:
        xf = jnp.pad(xf, ((0, 0), (0, 0), (0, hwp - hw)))

    w1 = params["fc1_w"].T                          # PyTorch (out,in) -> (C, 2C)
    b1 = params["fc1_b"].reshape(1, -1)             # (1, 2C)
    w2 = params["fc2_w"].T                          # (2C, C)
    b2 = params["fc2_b"].reshape(1, -1)             # (1, C)
    C2 = w1.shape[1]

    kernel = functools.partial(_channel_attention_kernel, hw)
    out = pl.pallas_call(
        kernel,
        out_shape=jax.ShapeDtypeStruct((B, 1, hwp), jnp.float32),
        grid_spec=pltpu.PrefetchScalarGridSpec(
            num_scalar_prefetch=0,
            grid=(B,),
            in_specs=[
                pl.BlockSpec((1, C, hwp), lambda b: (b, 0, 0)),
                pl.BlockSpec((C, C2), lambda b: (0, 0)),
                pl.BlockSpec((1, C2), lambda b: (0, 0)),
                pl.BlockSpec((C2, C), lambda b: (0, 0)),
                pl.BlockSpec((1, C), lambda b: (0, 0)),
            ],
            out_specs=pl.BlockSpec((1, 1, hwp), lambda b: (b, 0, 0)),
        ),
        compiler_params=pltpu.CompilerParams(
            dimension_semantics=("parallel",)),
    )(xf, w1, b1, w2, b2)
    # TODO(synk): for very large H*W the HW axis should be grid-tiled
    #             (two-pass: pooled-sum accumulation, then weighted sum) to
    #             bound VMEM; at mode_num-sized channel counts the whole
    #             (C, H*W) slab is tiny and fits comfortably on all chips.
    return out[:, :, :hw].reshape(B, 1, H, W)


# ----------------------------------------------------------------------------
# Parameters (deterministic synthetic init, PyTorch nn.Linear layout/semantics)
# ----------------------------------------------------------------------------
def init_channel_attention(key, mode_num):
    c_in, c_hid = mode_num, mode_num * 2
    k1, k2, k3, k4 = jax.random.split(key, 4)
    lim1 = 1.0 / float(jnp.sqrt(jnp.float32(c_in)))
    lim2 = 1.0 / float(jnp.sqrt(jnp.float32(c_hid)))
    return {
        "fc1_w": jax.random.uniform(k1, (c_hid, c_in), jnp.float32, -lim1, lim1),
        "fc1_b": jax.random.uniform(k2, (c_hid,), jnp.float32, -lim1, lim1),
        "fc2_w": jax.random.uniform(k3, (c_in, c_hid), jnp.float32, -lim2, lim2),
        "fc2_b": jax.random.uniform(k4, (c_in,), jnp.float32, -lim2, lim2),
    }


# ----------------------------------------------------------------------------
# Pure-JAX reference (NCHW) for correctness check
# ----------------------------------------------------------------------------
def _ref_forward(params, x):
    y = jnp.mean(x, axis=(2, 3))                                   # (B, C)
    h = jnp.maximum(y @ params["fc1_w"].T + params["fc1_b"], 0.0)  # (B, 2C)
    logits = h @ params["fc2_w"].T + params["fc2_b"]               # (B, C)
    attn = jax.nn.softmax(logits, axis=1)
    out = x * attn[:, :, None, None]
    return out.sum(axis=1, keepdims=True)                          # (B,1,H,W)


if __name__ == "__main__":
    B, mode_num, H, W = 2, 4, 16, 16

    key = jax.random.PRNGKey(0)
    kx, kp = jax.random.split(key)
    x = jax.random.normal(kx, (B, mode_num, H, W), jnp.float32)
    params = init_channel_attention(kp, mode_num)

    out = jax.block_until_ready(channel_attention_forward(params, x))
    assert out.shape == (B, 1, H, W)

    ref = jax.block_until_ready(_ref_forward(params, x))
    assert jnp.allclose(out, ref, atol=1e-4, rtol=1e-4), (
        float(jnp.max(jnp.abs(out - ref))))

    print("KERNEL_OK")
</pallas_src>

<mosaic_0001>
module attributes {stable_mosaic.version = 11 : i64} {
  func.func @_channel_attention_kernel(%arg0: i32, %arg1: memref<1x4x256xf32, #tpu.memory_space<vmem>>, %arg2: memref<4x8xf32, #tpu.memory_space<vmem>>, %arg3: memref<1x8xf32, #tpu.memory_space<vmem>>, %arg4: memref<8x4xf32, #tpu.memory_space<vmem>>, %arg5: memref<1x4xf32, #tpu.memory_space<vmem>>, %arg6: memref<1x1x256xf32, #tpu.memory_space<vmem>>) attributes {dimension_semantics = [#tpu.dimension_semantics<parallel>], iteration_bounds = array<i64: 2>, scalar_prefetch = 0 : i64, scratch_operands = 0 : i64, tpu.core_type = #tpu.core_type<tc>, window_params = [{transform_indices = @transform_0, window_bounds = array<i64: 1, 4, 256>}, {pipeline_mode = #tpu.pipeline_mode<synchronous>, transform_indices = @transform_1, window_bounds = array<i64: 4, 8>}, {pipeline_mode = #tpu.pipeline_mode<synchronous>, transform_indices = @transform_2, window_bounds = array<i64: 1, 8>}, {pipeline_mode = #tpu.pipeline_mode<synchronous>, transform_indices = @transform_3, window_bounds = array<i64: 8, 4>}, {pipeline_mode = #tpu.pipeline_mode<synchronous>, transform_indices = @transform_4, window_bounds = array<i64: 1, 4>}, {transform_indices = @transform_5, window_bounds = array<i64: 1, 1, 256>}]} {
    %c0 = arith.constant 0 : index
    %c0_0 = arith.constant 0 : index
    %c0_1 = arith.constant 0 : index
    %0 = vector.load %arg1[%c0, %c0_0, %c0_1] : memref<1x4x256xf32, #tpu.memory_space<vmem>>, vector<1x4x256xf32>
    %1 = vector.shape_cast %0 : vector<1x4x256xf32> to vector<4x256xf32>
    %cst = arith.constant dense<0.000000e+00> : vector<4xf32>
    %2 = vector.multi_reduction <add>, %1, %cst [1] : vector<4x256xf32> to vector<4xf32>
    %3 = vector.shape_cast %2 : vector<4xf32> to vector<4x1xf32>
    %cst_2 = arith.constant 3.906250e-03 : f32
    %4 = vector.broadcast %cst_2 : f32 to vector<4x1xf32>
    %5 = arith.mulf %3, %4 : vector<4x1xf32>
    %c0_3 = arith.constant 0 : index
    %c0_4 = arith.constant 0 : index
    %6 = vector.load %arg2[%c0_3, %c0_4] : memref<4x8xf32, #tpu.memory_space<vmem>>, vector<4x8xf32>
    %7 = vector.broadcast %5 : vector<4x1xf32> to vector<4x8xf32>
    %8 = arith.mulf %7, %6 : vector<4x8xf32>
    %cst_5 = arith.constant dense<0.000000e+00> : vector<8xf32>
    %9 = vector.multi_reduction <add>, %8, %cst_5 [0] : vector<4x8xf32> to vector<8xf32>
    %10 = vector.shape_cast %9 : vector<8xf32> to vector<1x8xf32>
    %c0_6 = arith.constant 0 : index
    %c0_7 = arith.constant 0 : index
    %11 = vector.load %arg3[%c0_6, %c0_7] : memref<1x8xf32, #tpu.memory_space<vmem>>, vector<1x8xf32>
    %12 = arith.addf %10, %11 : vector<1x8xf32>
    %cst_8 = arith.constant 0.000000e+00 : f32
    %13 = vector.broadcast %cst_8 : f32 to vector<1x8xf32>
    %14 = arith.maximumf %12, %13 : vector<1x8xf32>
    %c0_9 = arith.constant 0 : index
    %c0_10 = arith.constant 0 : index
    %15 = vector.load %arg4[%c0_9, %c0_10] : memref<8x4xf32, #tpu.memory_space<vmem>>, vector<8x4xf32>
    %cst_11 = arith.constant dense<0.000000e+00> : vector<1x4xf32>
    %16 = tpu.matmul %14, %15, %cst_11 {dimension_numbers = #tpu.dot_dimension_numbers<[1], [0], [0], [1], [0, 0, 1, 1], [], []>} : vector<1x8xf32>, vector<8x4xf32>, vector<1x4xf32> -> vector<1x4xf32>
    %c0_12 = arith.constant 0 : index
    %c0_13 = arith.constant 0 : index
    %17 = vector.load %arg5[%c0_12, %c0_13] : memref<1x4xf32, #tpu.memory_space<vmem>>, vector<1x4xf32>
    %18 = arith.addf %16, %17 : vector<1x4xf32>
    %cst_14 = arith.constant dense<0xFF800000> : vector<1xf32>
    %19 = vector.multi_reduction <maximumf>, %18, %cst_14 [1] : vector<1x4xf32> to vector<1xf32>
    %20 = vector.shape_cast %19 : vector<1xf32> to vector<1x1xf32>
    %21 = vector.broadcast %20 : vector<1x1xf32> to vector<1x4xf32>
    %22 = arith.subf %18, %21 : vector<1x4xf32>
    %23 = math.exp %22 : vector<1x4xf32>
    %cst_15 = arith.constant dense<0.000000e+00> : vector<1xf32>
    %24 = vector.multi_reduction <add>, %23, %cst_15 [1] : vector<1x4xf32> to vector<1xf32>
    %25 = vector.shape_cast %24 : vector<1xf32> to vector<1x1xf32>
    %26 = vector.broadcast %25 : vector<1x1xf32> to vector<1x4xf32>
    %27 = arith.divf %23, %26 : vector<1x4xf32>
    %cst_16 = arith.constant dense<0.000000e+00> : vector<1x256xf32>
    %28 = tpu.matmul %27, %1, %cst_16 {dimension_numbers = #tpu.dot_dimension_numbers<[1], [0], [0], [1], [0, 0, 1, 1], [], []>} : vector<1x4xf32>, vector<4x256xf32>, vector<1x256xf32> -> vector<1x256xf32>
    %c0_17 = arith.constant 0 : index
    %c0_18 = arith.constant 0 : index
    %c0_19 = arith.constant 0 : index
    %29 = vector.load %arg6[%c0_17, %c0_18, %c0_19] : memref<1x1x256xf32, #tpu.memory_space<vmem>>, vector<1x1x256xf32>
    %30 = vector.shape_cast %29 : vector<1x1x256xf32> to vector<1x256xf32>
    %31 = vector.shape_cast %28 : vector<1x256xf32> to vector<1x1x256xf32>
    tpu.vector_store %arg6[%c0_17, %c0_18, %c0_19], %31 {strides = array<i32>} : memref<1x1x256xf32, #tpu.memory_space<vmem>>, vector<1x1x256xf32>,
    return
  }
  func.func @transform_0(%arg0: i32) -> (i32, i32, i32) {
    %c0_i32 = arith.constant 0 : i32
    %c0_i32_0 = arith.constant 0 : i32
    %c0_i32_1 = arith.constant 0 : i32
    return %arg0, %c0_i32, %c0_i32_0 : i32, i32, i32
  }
  func.func @transform_1(%arg0: i32) -> (i32, i32) {
    %c0_i32 = arith.constant 0 : i32
    %c0_i32_0 = arith.constant 0 : i32
    %c0_i32_1 = arith.constant 0 : i32
    return %c0_i32, %c0_i32_0 : i32, i32
  }
  func.func @transform_2(%arg0: i32) -> (i32, i32) {
    %c0_i32 = arith.constant 0 : i32
    %c0_i32_0 = arith.constant 0 : i32
    %c0_i32_1 = arith.constant 0 : i32
    return %c0_i32, %c0_i32_0 : i32, i32
  }
  func.func @transform_3(%arg0: i32) -> (i32, i32) {
    %c0_i32 = arith.constant 0 : i32
    %c0_i32_0 = arith.constant 0 : i32
    %c0_i32_1 = arith.constant 0 : i32
    return %c0_i32, %c0_i32_0 : i32, i32
  }
  func.func @transform_4(%arg0: i32) -> (i32, i32) {
    %c0_i32 = arith.constant 0 : i32
    %c0_i32_0 = arith.constant 0 : i32
    %c0_i32_1 = arith.constant 0 : i32
    return %c0_i32, %c0_i32_0 : i32, i32
  }
  func.func @transform_5(%arg0: i32) -> (i32, i32, i32) {
    %c0_i32 = arith.constant 0 : i32
    %c0_i32_0 = arith.constant 0 : i32
    %c0_i32_1 = arith.constant 0 : i32
    return %arg0, %c0_i32, %c0_i32_0 : i32, i32, i32
  }
}

</mosaic_0001>

<bundles_post_ra>
// kernel: tpu_custom_call.1
= control target key start
LH: loop header
LB: loop body
LE: loop exit
PB: predicated region body
PF: predicated region fallthrough
CT: control target
= control target key end

     0   :  { %10 = vsyncpa [#allocation3], 0  ;;  %s904_s0 = inlined_call_operand.hbm [shape: f32[2,4,256], index: 0, kind: input, shape index: {}]   ;;  %s905_s1 = inlined_call_operand.vmem [shape: f32[4,8], index: 1, kind: input, shape index: {}]   ;;  %s906_s2 = inlined_call_operand.vmem [shape: f32[1,8], index: 2, kind: input, shape index: {}]   ;;  %s907_s3 = inlined_call_operand.vmem [shape: f32[8,4], index: 3, kind: input, shape index: {}]   ;;  %s908_s4 = inlined_call_operand.vmem [shape: f32[1,4], index: 4, kind: input, shape index: {}]   ;;  %s909_s5 = inlined_call_operand.hbm [shape: f32[2,1,256], index: 5, kind: output, shape index: {}]  }
   0x1   :  { %12 = vsyncpa [#allocation3 + $0x1], 0 }
   0x2   :  { %13 = vsyncpa [#allocation4], 0 }
   0x3   :  { %15 = vsyncpa [#allocation4 + $0x1], 0  ;;  %s750_s18 = smov 0   ;;  %s752_s19 = smov 0  }
   0x4   :  { %s754_s20 = smov 0   ;;  %s756_s21 = smov 0  }
   0x5 LB: > { %s771_s22 = sadd.s32 4294967295, %s713_s21   ;;  %s540_s23 = sadd.s32 4294967294, %s713_s21   ;;  %s713_s21 = sphi %s756_s21, %s926_s21   ;;  %s709_s20 = sphi %s754_s20, %s925_s20   ;;  %s705_s19 = sphi %s752_s19, %s924_s19   ;;  %s701_s18 = sphi %s750_s18, %s923_s18  }
   0x6   : > { %s775_s24 = sadd.s32 1, %s713_s21   ;;  %s28_s25 = sadd.s32 1, %s709_s20 }
   0x7   : > { %s25_s26 = ssub.s32 %s713_s21, %s775_s24  ;;  %p35_p0 = scmp.ne.s32.totalorder %s709_s20, %s705_s19 }
   0x8   : > { %p26_p1 = scmp.eq.s32.totalorder %s25_s26, 0  ;;  %p36_p2 = scmp.eq.s32.totalorder %s713_s21, 0 }
   0x9   : > { %p41_p3 = scmp.ne.s32.totalorder %s705_s19, %s701_s18  ;;  %p42_p4 = scmp.eq.s32.totalorder %s771_s22, 0 }
   0xa   : > { %s787_s27 = scalar_select %p26_p1, %s709_s20, %s28_s25  }
   0xb   : > { %p789_p5 = por %p36_p2, %p35_p0  ;;  %p793_p6 = por %p42_p4, %p41_p3 }
   0xc   : > { %p149_p7 = scmp.eq.s32.totalorder %s771_s22, 1  ;;  %p155_p8 = scmp.eq.s32.totalorder %s540_s23, 1 }
   0xd   : > { %s913_s29 = scalar_select %p793_p6, 1, 0 }
   0xe   : > { %p579_p10 = scmp.lt.s32.totalorder %s713_s21, 2  ;;  %p800_p11 = por %p149_p7, %p35_p0 }
   0xf   : > { %p804_p12 = por %p155_p8, %p41_p3  ;;  %s187_s7 = sand.u32 1, %s709_s20  }
  0x10   : > { %s914_s30 = scalar_select %p800_p11, 1, 0 }
  0x11   : > { %s915_s6 = scalar_select %p804_p12, 1, 0 }
  0x12   : > { %s558_s8 = sshll.u32 %s713_s21, 7  ;;  %s543_s9 = sshll.u32 %s187_s7, 3 }
  0x13   : > { %s813_s12 = scalar_lea.hbm %s904_s0, %s558_s8  ;;  %s191_s13 = scalar_lea.vmem [#allocation2], %s543_s9 }
  0x14   : > { %s199_s14 = sshll.u32 %s191_s13, 4  ;;  %p817_p13 = pnand %p579_p10, %p789_p5  ;;  %s821_s14 = int_to_ptr.vmem [resolvable:$true] %s199_s14 }
  0x15   : > { %s188_s16 = scalar_lea.sflag [#allocation3], %s187_s7  ;;  %s621_s17 = scalar_lea.hbm %s813_s12, 128 }
  0x16   : > { %p622_p2 = scmp.ne.s32.totalorder %s813_s12, %s621_s17  ;;  %p623_p3 = pneg %p817_p13 }
  0x17   : > { %s626_s26 = scalar_lea.hbm %s904_s0, 256  ;;  %p627_p5 = scmp.lt.s32.totalorder %s813_s12, %s904_s0 }
  0x18   : > { %p624_p4 = pnand %p623_p3, %p622_p2  ;;  %p628_p8 = scmp.lt.s32.totalorder %s626_s26, %s621_s17 }
  0x1a   : > { %p625_p7 = pneg %p624_p4  ;;  %p629_p10 = por %p628_p8, %p627_p5 }
  0x1c   : > { %p630_p9 = pnand %p629_p10, %p625_p7 }
  0x1e   : > { %633 = shalt.err (!%p630_p9)
}
  0x1f   : > { %s634_s7 = scalar_lea.vmem %s821_s14, 128  ;;  %s715_s9 = smov [#allocation2]  }
  0x20   : > { %p635_p0 = scmp.ne.s32.totalorder %s821_s14, %s634_s7  ;;  %s639_s10 = sshll.u32 %s715_s9, 4  ;;  %s640_s10 = int_to_ptr.vmem [resolvable:$false] %s639_s10 }
  0x21   : > { %s641_s11 = scalar_lea.vmem %s640_s10, 256  ;;  %p642_p4 = scmp.lt.s32.totalorder %s821_s14, %s640_s10 }
  0x22   : > { %p637_p1 = pnand %p635_p0, %p623_p3  ;;  %p643_p12 = scmp.lt.s32.totalorder %s641_s11, %s634_s7 }
  0x24   : > { %p638_p2 = pneg %p637_p1  ;;  %p644_p11 = por %p643_p12, %p642_p4 }
  0x26   : > { %p645_p6 = pnand %p644_p11, %p638_p2 }
  0x28   : > { %648 = shalt.err (!%p645_p6)
}
  0x29   : > { %574 = dma.hbm_to_vmem [thread:$0]  (!%p817_p13), %s813_s12, 128, %s821_s14, %s188_s16  }
  0x2a   : > { %p917_p9 = scmp.lt.s32.totalorder %s713_s21, 3  ;;  %p918_p7 = scmp.ge.s32.totalorder %s713_s21, 1 }
  0x2c   : > { %p205_p0 = pnand %p918_p7, %p917_p9 }
  0x2d   : > { %s848_s13 = sand.u32 (!%p205_p0), 1, %s705_s19   ;;  %p919_p6 = scmp.ne.s32.totalorder (!%p205_p0), %s913_s29, 0 }
  0x2e   : > { %208 = sbr.rel (%p205_p0) target bundleno = 938 (0x3aa), region = 40  ;;  %s547_s17 = sshll.u32 (!%p205_p0), %s848_s13, 3 }
  0x2f   : > { %s211_s23 = scalar_lea.sflag (!%p205_p0), [#allocation3], %s848_s13  ;;  %s214_s25 = scalar_lea.vmem (!%p205_p0), [#allocation2], %s547_s17 }
  0x33   : > { %692 = dma.done.wait (%p919_p6), %s211_s23, 128  }
  0x34   : > { %694 = vsyncadd (%p919_p6), %s211_s23, 4294967168  ;;  %vm245_vm0 = vcmask 1043456   ;;  %v241_v0 = vld [vmem:[%s214_s25] sm:$0xff]  ;;  %v716_v6 = vmov 0.0   ;;  %vm717_vm1 = vmmov 0   ;;  %vm254_vm2 = vcmask 60416  }
  0x35   : > { %v243_v1 = vcombine.high %v241_v0, %v241_v0  ;;  %v246_v2 = vsel %vm245_vm0, %v241_v0, 0.0  ;;  %v265_v5 = vld [vmem:[%s907_s3] sm:$0xff]  ;;  %562 = vmatprep.subr.mxu0 %v716_v6  ;;  %564 = vmatprep.mubr.msk.f32.mxu0 %vm717_vm1, %v716_v6  ;;  %vm267_vm3 = vcmask 64512   ;;  %vm341_vm4 = vcmask 24576   ;;  %s548_s7 = sshll.u32 %s848_s13, 1  ;;  %s559_s9 = sshll.u32 %s771_s22, 5 }
  0x36   : > { %563 = vmatpush3.msra.mxu0 %v265_v5  ;;  %425 = vmatprep.mubr.f32.mxu1 %v716_v6  ;;  %v252_v7 = vld [vmem:[%s905_s1] sm:$0xf]  ;;  %vm353_vm5 = vcmask 31744   ;;  %v718_v34 = vmov 1966171168   ;;  %v438_v36 = vlaneseq  ;;  %s240_s10 = scalar_lea.vmem [#allocation5], %s548_s7  ;;  %s468_s25 = scalar_lea.hbm %s909_s5, %s559_s9 }
  0x37   : > { %v247_v3 = vsel %vm245_vm0, %v243_v1, 0.0  ;;  %550 = vmatprep.subr.msk.mxu1 %vm245_vm0, %v243_v1  ;;  %v262_v17 = vld [vmem:[%s906_s2] sm:$0x1]  ;;  %v436_v35 = vunpack.c.l.s4 %v718_v34  ;;  %s470_s11 = sshll.u32 %s240_s10, 4  ;;  %s456_s12 = scalar_lea.sflag [#allocation4], %s848_s13  ;;  %s471_s11 = int_to_ptr.vmem [resolvable:$true] %s470_s11 }
  0x38   : > { %v248_v4 = vadd.f32 %v247_v3, %v246_v2  ;;  %551 = vmatpush1.msk.msra.mxu1 %vm245_vm0, %v241_v0  ;;  %v266_v21 = vld [vmem:[%s908_s4] sm:$0x1]  ;;  %v439_v38 = vshrl.u32 %v438_v36, 7  ;;  %vm452_vm6 = vcmp.lt.s32.totalorder %v438_v36, 256  ;;  %s649_s14 = scalar_lea.vmem %s471_s11, 32  ;;  %p920_p12 = scmp.ne.s32.totalorder %s914_s30, 0 }
  0x39   : > { %v437_v37 = vunpack.c.0.s8 %v436_v35  ;;  %p650_p11 = scmp.ne.s32.totalorder %s471_s11, %s649_s14  ;;  %s719_s29 = smov [#allocation5]  }
  0x3a   : > { %249 = vadd.xlane.f32.xlu0 %v248_v4  ;;  %s653_s15 = sshll.u32 %s719_s29, 4  ;;  %s654_s15 = int_to_ptr.vmem [resolvable:$false] %s653_s15 }
  0x3b   : > { %v440_v40 = vsub.s32 %v437_v37, %v439_v38  ;;  %p651_p13 = pnand %p650_p11, %p920_p12  ;;  %s655_s22 = scalar_lea.vmem %s654_s15, 64 }
  0x3c   : > { %p656_p3 = scmp.lt.s32.totalorder %s471_s11, %s654_s15  ;;  %p657_p5 = scmp.lt.s32.totalorder %s655_s22, %s649_s14 }
  0x3d   : > { %p652_p1 = pneg %p651_p13 }
  0x3e   : > { %p658_p8 = por %p657_p5, %p656_p3 }
  0x40   : > { %p659_p10 = pnand %p658_p8, %p652_p1 }
  0xc3   : > { %v250_v8 = vpop.xlane.xlu0 %249 }
  0xc4   : > { %v251_v9 = vmul.f32 0.00390625, %v250_v8 }
  0xc6   : > { %v253_v10 = vmul.f32 %v252_v7, %v251_v9 }
  0xc8   : > { %v255_v11 = vsel %vm254_vm2, %v253_v10, 0.0 }
  0xc9   : > { %v256_v12 = vrot.slane %v255_v11, 4 }
  0xcb   : > { %v257_v13 = vadd.f32 %v256_v12, %v255_v11 }
  0xcd   : > { %v258_v14 = vrot.slane %v257_v13, 2 }
  0xcf   : > { %v259_v15 = vadd.f32 %v258_v14, %v257_v13 }
  0xd1   : > { %v260_v16 = vrot.slane %v259_v15, 1 }
  0xd3   : > { %v261_v18 = vadd.f32 %v260_v16, %v259_v15 }
  0xd5   : > { %v263_v19 = vadd.f32 %v262_v17, %v261_v18 }
  0xd7   : > { %v264_v20 = vmax.f32 %v263_v19, 0.0 }
  0xd9   : > { %565 = vmatmul.mubr.msk.f32.vlgmr.msra.gmra.mxu0 %vm267_vm3, %v264_v20 }
 0x199   : > { %v337_v22 = vpop.f32.mrf.mxu0 }
 0x19a   : > { %v338_v23 = vadd.f32 %v337_v22, %v266_v21 }
 0x19b   : > { %v566_v24 = vpop.f32.mrf.mxu0 }
 0x19c   : > { %v342_v25 = vsel %vm341_vm4, %v338_v23, -inf }
 0x19d   : > { %343 = vmax.xlane.f32.xlu0 %v342_v25 }
 0x226   : > { %v344_v26 = vpop.xlane.xlu0 %343 }
 0x227   : > { %v345_v27 = vsub.f32 %v338_v23, %v344_v26 }
 0x229   : > { %v346_v28 = vmul.f32 1.442695, %v345_v27 }
 0x22b   : > { %617 = vpow2.f32 %v346_v28 }
 0x238   : > { %v618_v29 = vpop.eup %617 }
 0x239   : > { %v348_v30 = vsel %vm341_vm4, %v618_v29, 0.0 }
 0x23a   : > { %349 = vadd.xlane.f32.xlu1 %v348_v30 }
 0x2c3   : > { %v350_v31 = vpop.xlane.xlu1 %349 }
 0x2c4   : > { %619 = vrcp.f32 %v350_v31 }
 0x2d1   : > { %v620_v32 = vpop.eup %619 }
 0x2d2   : > { %v352_v33 = vmul.f32 %v620_v32, %v618_v29 }
 0x2d4   : > { %552 = vmatmul.mubr.msk.f32.vlgmr.msra.gmra.mxu1 %vm353_vm5, %v352_v33 }
 0x394   : > { %v427_v39 = vpop.f32.mrf.mxu1 }
 0x396   : > { %v429_v41 = vpop.f32.mrf.mxu1 }
 0x397   : > { %v434_v42 = vcombine.low %v427_v39, %v429_v41 }
 0x399   : > { %v441_v43 = vrot.slane %v434_v42, %v440_v40 }
 0x39b   : > { %v448_v44 = vrot.slane %v441_v43, %v440_v40 }
 0x39d   : > { %454 = vst.msk [vmem:[%s240_s10] sm:$0x3] %vm452_vm6, %v448_v44 }
 0x39e   : > { %662 = shalt.err (!%p659_p10)
}
 0x39f   : > { %s663_s16 = scalar_lea.hbm %s468_s25, 32  ;;  %s667_s28 = scalar_lea.hbm %s909_s5, 64 }
 0x3a0   : > { %p664_p2 = scmp.ne.s32.totalorder %s468_s25, %s663_s16  ;;  %p668_p7 = scmp.lt.s32.totalorder %s468_s25, %s909_s5 }
 0x3a1   : > { %p669_p0 = scmp.lt.s32.totalorder %s667_s28, %s663_s16 }
 0x3a2   : > { %p665_p4 = pnand %p664_p2, %p920_p12 }
 0x3a3   : > { %p670_p6 = por %p669_p0, %p668_p7 }
 0x3a4   : > { %p666_p9 = pneg %p665_p4 }
 0x3a6   : > { %p671_p11 = pnand %p670_p6, %p666_p9 }
 0x3a8   : > { %674 = shalt.err (!%p671_p11)
}
 0x3a9   : > { %569 = dma.vmem_to_hbm [thread:$0]  (%p920_p12), %s471_s11, 32, %s468_s25, %s456_s12  }
 0x3aa PF: > { %s482_s9 = sand.u32 1, %s701_s18   ;;  %p921_p13 = scmp.ne.s32.totalorder %s915_s6, 0 }
 0x3ab   : > { %p922_p1 = scmp.ge.s32.totalorder %s713_s21, 2  ;;  %s483_s10 = scalar_lea.sflag [#allocation4], %s482_s9 }
 0x3ad   : > { %p576_p3 = pnand %p922_p1, %p921_p13 }
 0x3af   : > { %p577_p5 = pneg %p576_p3 }
 0x3b1   : > { %696 = dma.done.wait (%p577_p5), %s483_s10, 32  }
 0x3b2   : > { %698 = vsyncadd (%p577_p5), %s483_s10, 4294967264  ;;  %p18_p8 = scmp.ge.s32.totalorder %s775_s24, 4   ;;  %s923_s18 = smov %s705_s19 }
 0x3b3   : > { %s924_s19 = smov %s709_s20  ;;  %s925_s20 = smov %s787_s27 }
 0x3b4   : > { %s926_s21 = smov %s775_s24  ;;  %20 = sbr.rel (!%p18_p8) target bundleno = 5 (0x5), region = 85 }
 0x3b9   :  { %488 = vsyncpa [#allocation3], 1 }
 0x3ba   :  { %490 = vsyncpa [#allocation3 + $0x1], 1 }
 0x3bb   :  { %491 = vsyncpa [#allocation4], 1 }
 0x3bc   :  { %493 = vsyncpa [#allocation4 + $0x1], 1 }

</bundles_post_ra>
